<compile_context>
chip_gen: v7x
topology: tpu7x:2x2x1
jax: 0.10.0
libtpu: 0.0.40
codegen_flags: <defaults>
</compile_context>

<pallas_src>
import functools

import jax
import jax.numpy as jnp
from jax.experimental import pallas as pl
from jax.experimental.pallas import tpu as pltpu

TN = 128                # lane width (vreg)
MAX_BLOCK_ROWS = 4096   # 4096 x 128 x 4B = 2 MiB per f32 input block


def _dice_partial_kernel(p_ref, t_ref, inter_ref, union_ref, *,
                         block_rows, blocks_per_chunk, valid_rows, mask_tail):
    """Accumulate (8,128)-shaped partial sums of p*t and p+t per chunk."""
    c = pl.program_id(0)   # parallel chunk (megacore axis on v7x)
    i = pl.program_id(1)   # serial reduction step within the chunk

    @pl.when(i == 0)
    def _():
        inter_ref[...] = jnp.zeros_like(inter_ref)
        union_ref[...] = jnp.zeros_like(union_ref)

    # Cast in-kernel so half-precision inputs travel over HBM in native width.
    p = p_ref[...].astype(jnp.float32)
    t = t_ref[...].astype(jnp.float32)

    if mask_tail:
        # Blocks may cover rows past the end of the (rows, 128) array (ragged
        # last block, or a clamped duplicate block when the chunk split does
        # not divide the block count); those regions hold unspecified /
        # duplicated data, so zero them before accumulating.
        row0 = (c * blocks_per_chunk + i) * block_rows
        row_ids = row0 + jax.lax.broadcasted_iota(
            jnp.int32, (block_rows, TN), 0)
        keep = row_ids < valid_rows
        p = jnp.where(keep, p, 0.0)
        t = jnp.where(keep, t, 0.0)

    # Elementwise (VPU) accumulation into vreg-shaped partial sums.  The
    # reshape groups rows into (8,128) vregs so the axis-0 sum is pure
    # vreg+vreg adds (no per-tile XLU cross-lane reduction, no scalar RMW).
    inter_ref[...] += jnp.sum((p * t).reshape(-1, 8, TN), axis=0)
    union_ref[...] += jnp.sum((p + t).reshape(-1, 8, TN), axis=0)


def _sublane_multiple(dtype):
    # Minimum second-to-last tile dim: 8 for 4-byte, 16 for 2-byte dtypes.
    return max(8, 32 // jnp.dtype(dtype).itemsize)


def _as_kernel_dtype(x):
    # Keep native float dtypes (bf16/f16/f32) to avoid doubling HBM traffic;
    # cast anything else (bool/int/f64) to f32 once in the wrapper.
    if (not jnp.issubdtype(x.dtype, jnp.floating)) or jnp.dtype(x.dtype).itemsize > 4:
        return x.astype(jnp.float32)
    return x


def dice_loss(predictions, targets, smooth=1.0):
    """Pallas TPU implementation of DiceLoss.forward (returns scalar f32)."""
    p = _as_kernel_dtype(jnp.ravel(predictions))
    t = _as_kernel_dtype(jnp.ravel(targets))
    n = p.shape[0]

    # Align the flat length so it reshapes to (rows, 128) with `rows` a
    # multiple of the sublane tile required by both dtypes.  This pads at
    # most sublane*128 - 1 zeros (zeros do not change any of the sums) and is
    # a no-op for aligned sizes.
    sub = max(_sublane_multiple(p.dtype), _sublane_multiple(t.dtype))
    align = sub * TN
    n_pad = pl.cdiv(n, align) * align
    pad = n_pad - n
    if pad:
        p = jnp.pad(p, (0, pad))
        t = jnp.pad(t, (0, pad))

    rows = n_pad // TN
    p2 = p.reshape(rows, TN)
    t2 = t.reshape(rows, TN)

    block_rows = min(MAX_BLOCK_ROWS, rows)   # small inputs -> single block
    total_blocks = pl.cdiv(rows, block_rows)

    # Outer "parallel" axis of (up to) 2 chunks so v7x shards the reduction
    # across both TensorCores; inner "arbitrary" axis is the serial
    # accumulation within a chunk.
    num_chunks = 2 if total_blocks >= 2 else 1
    blocks_per_chunk = pl.cdiv(total_blocks, num_chunks)
    padded_blocks = num_chunks * blocks_per_chunk

    clamp_tail = padded_blocks != total_blocks        # duplicate last block
    mask_tail = clamp_tail or (rows % block_rows != 0)  # ragged last block

    def in_index_map(c, i):
        blk = c * blocks_per_chunk + i
        if clamp_tail:
            blk = jnp.minimum(blk, total_blocks - 1)
        return (blk, 0)

    kernel = functools.partial(
        _dice_partial_kernel,
        block_rows=block_rows,
        blocks_per_chunk=blocks_per_chunk,
        valid_rows=rows,
        mask_tail=mask_tail,
    )

    inter_part, union_part = pl.pallas_call(
        kernel,
        out_shape=(
            jax.ShapeDtypeStruct((8 * num_chunks, TN), jnp.float32),
            jax.ShapeDtypeStruct((8 * num_chunks, TN), jnp.float32),
        ),
        grid_spec=pltpu.PrefetchScalarGridSpec(
            num_scalar_prefetch=0,
            grid=(num_chunks, blocks_per_chunk),
            in_specs=[
                pl.BlockSpec((block_rows, TN), in_index_map),
                pl.BlockSpec((block_rows, TN), in_index_map),
            ],
            out_specs=[
                pl.BlockSpec((8, TN), lambda c, i: (c, 0)),
                pl.BlockSpec((8, TN), lambda c, i: (c, 0)),
            ],
        ),
        compiler_params=pltpu.CompilerParams(
            dimension_semantics=("parallel", "arbitrary"),
            vmem_limit_bytes=32 * 1024 * 1024,
        ),
    )(p2, t2)

    # Single cross-lane reduction + dice formula (handles traced `smooth` too).
    intersection = jnp.sum(inter_part)
    union = jnp.sum(union_part)
    dice_coefficient = (2.0 * intersection + smooth) / (union + smooth)
    return (1.0 - dice_coefficient).astype(jnp.float32)


def _dice_loss_ref(predictions, targets, smooth=1.0):
    p = jnp.ravel(predictions).astype(jnp.float32)
    t = jnp.ravel(targets).astype(jnp.float32)
    intersection = jnp.sum(p * t)
    union = jnp.sum(p) + jnp.sum(t)
    return 1.0 - (2.0 * intersection + smooth) / (union + smooth)


def _check(shape, k_pred, k_tgt, name):
    predictions = jax.nn.sigmoid(jax.random.normal(k_pred, shape, dtype=jnp.float32))
    targets = (jax.random.uniform(k_tgt, shape) > 0.5).astype(jnp.float32)
    loss = jax.block_until_ready(dice_loss(predictions, targets, smooth=1.0))
    ref = _dice_loss_ref(predictions, targets, smooth=1.0)
    assert jnp.allclose(loss, ref, atol=1e-4, rtol=1e-4), (name, loss, ref)


if __name__ == "__main__":
    key = jax.random.PRNGKey(0)
    k1, k2, k3, k4, k5, k6 = jax.random.split(key, 6)

    # Small NCHW segmentation-style inputs: (batch=2, channels=4, H=16, W=16).
    # Single tiny block, grid (1, 1).
    _check((2, 4, 16, 16), k1, k2, "small")

    # Exercises the 2-chunk parallel split with a ragged (masked) last block:
    # 2*4*272*272 = 591872 elems -> 4624 rows -> 2 blocks of 4096, one per chunk.
    _check((2, 4, 272, 272), k3, k4, "two_chunks_ragged")

    # Exercises wrapper padding + odd block count (clamped duplicate block):
    # 1*3*600*600 = 1080000 elems -> pad to 8440 rows -> 3 blocks over 2 chunks.
    _check((1, 3, 600, 600), k5, k6, "padded_clamped")

    print("KERNEL_OK")
</pallas_src>

<mosaic_0001>
module attributes {stable_mosaic.version = 11 : i64} {
  func.func @_dice_partial_kernel(%arg0: i32, %arg1: i32, %arg2: memref<16x128xf32, #tpu.memory_space<vmem>>, %arg3: memref<16x128xf32, #tpu.memory_space<vmem>>, %arg4: memref<8x128xf32, #tpu.memory_space<vmem>>, %arg5: memref<8x128xf32, #tpu.memory_space<vmem>>) attributes {dimension_semantics = [#tpu.dimension_semantics<parallel>, #tpu.dimension_semantics<arbitrary>], iteration_bounds = array<i64: 1, 1>, scalar_prefetch = 0 : i64, scratch_operands = 0 : i64, tpu.core_type = #tpu.core_type<tc>, window_params = [{transform_indices = @transform_0, window_bounds = array<i64: 16, 128>}, {transform_indices = @transform_1, window_bounds = array<i64: 16, 128>}, {transform_indices = @transform_2, window_bounds = array<i64: 8, 128>}, {transform_indices = @transform_3, window_bounds = array<i64: 8, 128>}]} {
    %c0_i32 = arith.constant 0 : i32
    %0 = arith.cmpi eq, %arg1, %c0_i32 : i32
    %1 = arith.extui %0 : i1 to i32
    %c0_i32_0 = arith.constant 0 : i32
    %2 = arith.cmpi ne, %1, %c0_i32_0 : i32
    scf.if %2 {
      %cst_13 = arith.constant 0.000000e+00 : f32
      %17 = vector.broadcast %cst_13 : f32 to vector<8x128xf32>
      %c0_14 = arith.constant 0 : index
      %c0_15 = arith.constant 0 : index
      %18 = vector.load %arg4[%c0_14, %c0_15] : memref<8x128xf32, #tpu.memory_space<vmem>>, vector<8x128xf32>
      tpu.vector_store %arg4[%c0_14, %c0_15], %17 {strides = array<i32>} : memref<8x128xf32, #tpu.memory_space<vmem>>, vector<8x128xf32>,
      %cst_16 = arith.constant 0.000000e+00 : f32
      %19 = vector.broadcast %cst_16 : f32 to vector<8x128xf32>
      %c0_17 = arith.constant 0 : index
      %c0_18 = arith.constant 0 : index
      %20 = vector.load %arg5[%c0_17, %c0_18] : memref<8x128xf32, #tpu.memory_space<vmem>>, vector<8x128xf32>
      tpu.vector_store %arg5[%c0_17, %c0_18], %19 {strides = array<i32>} : memref<8x128xf32, #tpu.memory_space<vmem>>, vector<8x128xf32>,
    } else {
    }
    %c0 = arith.constant 0 : index
    %c0_1 = arith.constant 0 : index
    %3 = vector.load %arg2[%c0, %c0_1] : memref<16x128xf32, #tpu.memory_space<vmem>>, vector<16x128xf32>
    %c0_2 = arith.constant 0 : index
    %c0_3 = arith.constant 0 : index
    %4 = vector.load %arg3[%c0_2, %c0_3] : memref<16x128xf32, #tpu.memory_space<vmem>>, vector<16x128xf32>
    %c0_4 = arith.constant 0 : index
    %c0_5 = arith.constant 0 : index
    %5 = vector.load %arg4[%c0_4, %c0_5] : memref<8x128xf32, #tpu.memory_space<vmem>>, vector<8x128xf32>
    %6 = arith.mulf %3, %4 : vector<16x128xf32>
    %7 = vector.shape_cast %6 : vector<16x128xf32> to vector<2x8x128xf32>
    %cst = arith.constant dense<0.000000e+00> : vector<8x128xf32>
    %8 = vector.multi_reduction <add>, %7, %cst [0] : vector<2x8x128xf32> to vector<8x128xf32>
    %9 = arith.addf %5, %8 : vector<8x128xf32>
    %c0_6 = arith.constant 0 : index
    %c0_7 = arith.constant 0 : index
    %10 = vector.load %arg4[%c0_6, %c0_7] : memref<8x128xf32, #tpu.memory_space<vmem>>, vector<8x128xf32>
    tpu.vector_store %arg4[%c0_6, %c0_7], %9 {strides = array<i32>} : memref<8x128xf32, #tpu.memory_space<vmem>>, vector<8x128xf32>,
    %c0_8 = arith.constant 0 : index
    %c0_9 = arith.constant 0 : index
    %11 = vector.load %arg5[%c0_8, %c0_9] : memref<8x128xf32, #tpu.memory_space<vmem>>, vector<8x128xf32>
    %12 = arith.addf %3, %4 : vector<16x128xf32>
    %13 = vector.shape_cast %12 : vector<16x128xf32> to vector<2x8x128xf32>
    %cst_10 = arith.constant dense<0.000000e+00> : vector<8x128xf32>
    %14 = vector.multi_reduction <add>, %13, %cst_10 [0] : vector<2x8x128xf32> to vector<8x128xf32>
    %15 = arith.addf %11, %14 : vector<8x128xf32>
    %c0_11 = arith.constant 0 : index
    %c0_12 = arith.constant 0 : index
    %16 = vector.load %arg5[%c0_11, %c0_12] : memref<8x128xf32, #tpu.memory_space<vmem>>, vector<8x128xf32>
    tpu.vector_store %arg5[%c0_11, %c0_12], %15 {strides = array<i32>} : memref<8x128xf32, #tpu.memory_space<vmem>>, vector<8x128xf32>,
    return
  }
  func.func @transform_0(%arg0: i32, %arg1: i32) -> (i32, i32) {
    %c1_i32 = arith.constant 1 : i32
    %0 = arith.muli %arg0, %c1_i32 : i32
    %1 = arith.addi %0, %arg1 : i32
    %c0_i32 = arith.constant 0 : i32
    %c0_i32_0 = arith.constant 0 : i32
    return %1, %c0_i32 : i32, i32
  }
  func.func @transform_1(%arg0: i32, %arg1: i32) -> (i32, i32) {
    %c1_i32 = arith.constant 1 : i32
    %0 = arith.muli %arg0, %c1_i32 : i32
    %1 = arith.addi %0, %arg1 : i32
    %c0_i32 = arith.constant 0 : i32
    %c0_i32_0 = arith.constant 0 : i32
    return %1, %c0_i32 : i32, i32
  }
  func.func @transform_2(%arg0: i32, %arg1: i32) -> (i32, i32) {
    %c0_i32 = arith.constant 0 : i32
    %c0_i32_0 = arith.constant 0 : i32
    return %arg0, %c0_i32 : i32, i32
  }
  func.func @transform_3(%arg0: i32, %arg1: i32) -> (i32, i32) {
    %c0_i32 = arith.constant 0 : i32
    %c0_i32_0 = arith.constant 0 : i32
    return %arg0, %c0_i32 : i32, i32
  }
}

</mosaic_0001>

<bundles_post_ra>
// kernel: tpu_custom_call.1
= control target key start
LH: loop header
LB: loop body
LE: loop exit
PB: predicated region body
PF: predicated region fallthrough
CT: control target
= control target key end

     0   :  { %9 = vsyncpa [#allocation3], 0  ;;  %s284_s0 = inlined_call_operand.hbm [shape: f32[16,128], index: 0, kind: input, shape index: {}]   ;;  %s285_s1 = inlined_call_operand.hbm [shape: f32[16,128], index: 1, kind: input, shape index: {}]   ;;  %s286_s2 = inlined_call_operand.hbm [shape: f32[8,128], index: 2, kind: output, shape index: {0}]   ;;  %s287_s3 = inlined_call_operand.hbm [shape: f32[8,128], index: 3, kind: output, shape index: {1}]  }
   0x1   :  { %10 = vsyncpa [#allocation6], 0 }
   0x2   :  { %11 = vsyncpa [#allocation4], 0 }
   0x3   :  { %12 = vsyncpa [#allocation9], 0  ;;  %s210_s12 = smov [#allocation2]   ;;  %s114_s16 = scalar_lea.hbm %s284_s0, 256 }
   0x4   :  { %s22_s13 = sshll.u32 %s210_s12, 4  ;;  %p115_p0 = scmp.ne.s32.totalorder %s284_s0, %s114_s16  ;;  %s23_s13 = int_to_ptr.vmem [resolvable:$true] %s22_s13 }
   0x5   :  { %p118_p1 = scmp.lt.u32.totalorder %s114_s16, %s284_s0 }
   0x7   :  { %p120_p2 = pnand %p118_p1, %p115_p0 }
   0x9   :  { %123 = shalt.err (!%p120_p2)
}
   0xa   :  { %s124_s21 = scalar_lea.vmem %s23_s13, 256  ;;  %p129_p4 = scmp.lt.s32.totalorder %s23_s13, %s23_s13 }
   0xb   :  { %p125_p3 = scmp.ne.s32.totalorder %s23_s13, %s124_s21  ;;  %p130_p5 = scmp.lt.s32.totalorder %s124_s21, %s124_s21 }
   0xd   :  { %p131_p6 = por %p130_p5, %p129_p4 }
   0xf   :  { %p132_p7 = pnand %p131_p6, %p125_p3 }
  0x11   :  { %135 = shalt.err (!%p132_p7)
}
  0x12   :  { %s211_s22 = smov 128   ;;  %s212_s23 = smov 8  }
  0x13   :  { %28 = dma.hbm_to_vmem [thread:$0]  %s284_s0, 256, %s23_s13, [#allocation3], %s211_s22, %s211_s22, %s212_s23  }
  0x14   :  { %s213_s26 = smov [#allocation5]   ;;  %s136_s30 = scalar_lea.hbm %s285_s1, 256 }
  0x15   :  { %s38_s27 = sshll.u32 %s213_s26, 4  ;;  %p137_p8 = scmp.ne.s32.totalorder %s285_s1, %s136_s30  ;;  %s39_s27 = int_to_ptr.vmem [resolvable:$true] %s38_s27 }
  0x16   :  { %p140_p9 = scmp.lt.u32.totalorder %s136_s30, %s285_s1 }
  0x18   :  { %p142_p10 = pnand %p140_p9, %p137_p8 }
  0x1a   :  { %145 = shalt.err (!%p142_p10)
}
  0x1b   :  { %s146_s8 = scalar_lea.vmem %s39_s27, 256  ;;  %p151_p12 = scmp.lt.s32.totalorder %s39_s27, %s39_s27 }
  0x1c   :  { %p147_p11 = scmp.ne.s32.totalorder %s39_s27, %s146_s8  ;;  %p152_p13 = scmp.lt.s32.totalorder %s146_s8, %s146_s8 }
  0x1e   :  { %p153_p0 = por %p152_p13, %p151_p12 }
  0x20   :  { %p154_p1 = pnand %p153_p0, %p147_p11 }
  0x22   :  { %157 = shalt.err (!%p154_p1)
}
  0x23   :  { %44 = dma.hbm_to_vmem [thread:$0]  %s285_s1, 256, %s39_s27, [#allocation6], %s211_s22, %s211_s22, %s212_s23  }
  0x24   :  { %202 = dma.done.wait [#allocation3], 256  }
  0x25   :  { %203 = vsyncadd [#allocation3], 4294967040 }
  0x26   :  { %204 = dma.done.wait [#allocation6], 256  }
  0x27   :  { %205 = vsyncadd [#allocation6], 4294967040  ;;  %v61_v0 = vld [vmem:[#allocation2] sm:$0xff]  ;;  %v62_v1 = vld [vmem:[#allocation2 + $0x8] sm:$0xff]  ;;  %s214_s10 = smov [#allocation7]   ;;  %s215_s12 = smov [#allocation8]  }
  0x28   :  { %v63_v2 = vld [vmem:[#allocation5] sm:$0xff]  ;;  %v64_v3 = vld [vmem:[#allocation5 + $0x8] sm:$0xff]  ;;  %s83_s11 = sshll.u32 %s214_s10, 4  ;;  %s93_s13 = sshll.u32 %s215_s12, 4  ;;  %s84_s11 = int_to_ptr.vmem [resolvable:$true] %s83_s11  ;;  %s94_s13 = int_to_ptr.vmem [resolvable:$true] %s93_s13 }
  0x29   :  { %v66_v4 = vmul.f32 %v63_v2, %v61_v0  ;;  %v72_v5 = vadd.f32 %v63_v2, %v61_v0  ;;  %v67_v6 = vmul.f32 %v64_v3, %v62_v1  ;;  %v73_v7 = vadd.f32 %v64_v3, %v62_v1  ;;  %s158_s1 = scalar_lea.vmem %s84_s11, 128  ;;  %p163_p3 = scmp.lt.s32.totalorder %s84_s11, %s84_s11 }
  0x2a   :  { %p159_p2 = scmp.ne.s32.totalorder %s84_s11, %s158_s1  ;;  %p164_p4 = scmp.lt.s32.totalorder %s158_s1, %s158_s1 }
  0x2b   :  { %v68_v8 = vadd.f32 %v67_v6, %v66_v4  ;;  %v74_v9 = vadd.f32 %v73_v7, %v72_v5 }
  0x2c   :  { %p165_p5 = por %p164_p4, %p163_p3 }
  0x2d   :  { %70 = vst [vmem:[#allocation7] sm:$0xff] %v68_v8  ;;  %76 = vst [vmem:[#allocation8] sm:$0xff] %v74_v9 }
  0x2e   :  { %p166_p6 = pnand %p165_p5, %p159_p2 }
  0x30   :  { %169 = shalt.err (!%p166_p6)
}
  0x31   :  { %s170_s16 = scalar_lea.hbm %s286_s2, 128 }
  0x32   :  { %p171_p7 = scmp.ne.s32.totalorder %s286_s2, %s170_s16  ;;  %p174_p8 = scmp.lt.u32.totalorder %s170_s16, %s286_s2 }
  0x34   :  { %p176_p9 = pnand %p174_p8, %p171_p7 }
  0x36   :  { %179 = shalt.err (!%p176_p9)
}
  0x37   :  { %86 = dma.vmem_to_hbm [thread:$0]  %s84_s11, 128, %s286_s2, [#allocation4]  }
  0x38   :  { %s180_s23 = scalar_lea.vmem %s94_s13, 128  ;;  %p185_p11 = scmp.lt.s32.totalorder %s94_s13, %s94_s13 }
  0x39   :  { %p181_p10 = scmp.ne.s32.totalorder %s94_s13, %s180_s23  ;;  %p186_p12 = scmp.lt.s32.totalorder %s180_s23, %s180_s23 }
  0x3b   :  { %p187_p13 = por %p186_p12, %p185_p11 }
  0x3d   :  { %p188_p0 = pnand %p187_p13, %p181_p10 }
  0x3f   :  { %191 = shalt.err (!%p188_p0)
}
  0x40   :  { %s192_s26 = scalar_lea.hbm %s287_s3, 128 }
  0x41   :  { %p193_p1 = scmp.ne.s32.totalorder %s287_s3, %s192_s26  ;;  %p196_p2 = scmp.lt.u32.totalorder %s192_s26, %s287_s3 }
  0x43   :  { %p198_p3 = pnand %p196_p2, %p193_p1 }
  0x45   :  { %201 = shalt.err (!%p198_p3)
}
  0x46   :  { %96 = dma.vmem_to_hbm [thread:$0]  %s94_s13, 128, %s287_s3, [#allocation9]  }
  0x47   :  { %206 = dma.done.wait [#allocation4], 128  }
  0x48   :  { %207 = vsyncadd [#allocation4], 4294967168 }
  0x49   :  { %208 = dma.done.wait [#allocation9], 128  }
  0x4a   :  { %209 = vsyncadd [#allocation9], 4294967168 }
  0x4b   :  { %103 = vsyncpa [#allocation3], 1 }
  0x4c   :  { %104 = vsyncpa [#allocation6], 1 }
  0x4d   :  { %105 = vsyncpa [#allocation4], 1 }
  0x4e   :  { %106 = vsyncpa [#allocation9], 1 }

</bundles_post_ra>
